<compile_context>
chip_gen: v7x
topology: tpu7x:2x2x1
jax: 0.10.0
libtpu: 0.0.40
codegen_flags: <defaults>
</compile_context>

<pallas_src>
import functools
import math

import jax
import jax.numpy as jnp
from jax.experimental import pallas as pl
from jax.experimental.pallas import tpu as pltpu

NUM_CLASSES = 1          # single-object tracking -> 1 foreground class
EOS_COEF = 0.0625        # weight of the no-object class
C = NUM_CLASSES + 1      # logits channels (== 2)


# ----------------------------- Pallas kernel ------------------------------

def _atan(x):
    # TODO(synk): jnp.arctan lowering on Mosaic is not guaranteed; A&S 4.4.47
    # polynomial (|err| <= ~1e-5 rad) with sign handling + 1/x range reduction.
    sgn = jnp.where(x < 0.0, -1.0, 1.0)
    ax = jnp.abs(x)
    inv = ax > 1.0
    z = jnp.where(inv, pl.reciprocal(jnp.maximum(ax, 1e-30), approx=True), ax)
    z2 = z * z
    p = z * (0.9998660
             + z2 * (-0.3302995
                     + z2 * (0.1801410
                             + z2 * (-0.0851330 + z2 * 0.0208351))))
    return sgn * jnp.where(inv, (math.pi / 2.0) - p, p)


def _criterion_kernel(logits_ref, boxes_ref, tgt_ref, out_ref,
                      *, eos_coef, inv_num_boxes, inv_m, n_queries):
    """Fused matcher + losses.

    logits_ref : VMEM [2, B, N]  (row 0 = foreground logit, row 1 = no-object)
    boxes_ref  : VMEM [4, B, N]  (rows cx, cy, w, h of predicted boxes)
    tgt_ref    : VMEM [4, B, 1]  (rows cx, cy, w, h of target boxes)
    out_ref    : SMEM f32[8]
      [0] loss_ce  [1] class_error  [2] loss_bbox  [3] loss_ciou  [4] iou
      [5..7] padding (zeros)
    """
    l0 = logits_ref[0].astype(jnp.float32)          # [B, N] foreground logit
    l1 = logits_ref[1].astype(jnp.float32)          # [B, N] no-object logit

    pcx = boxes_ref[0].astype(jnp.float32)          # [B, N] predicted cx
    pcy = boxes_ref[1].astype(jnp.float32)
    pw = boxes_ref[2].astype(jnp.float32)
    ph = boxes_ref[3].astype(jnp.float32)

    tcx = tgt_ref[0].astype(jnp.float32)            # [B, 1] target cx
    tcy = tgt_ref[1].astype(jnp.float32)
    tw = tgt_ref[2].astype(jnp.float32)
    th = tgt_ref[3].astype(jnp.float32)

    # ---------------- matcher: greedy per-image argmin -----------------------
    # TODO(synk): Hungarian matcher replaced by per-image argmin of
    # (cost_bbox + cost_class) — exact for one target box per image (SOT).
    # cost_class = -softmax(logits)[:, :, 0] = -sigmoid(l0 - l1)   (label == 0)
    cost_class = -1.0 / (1.0 + jnp.exp(l1 - l0))                    # [B, N]
    cost_bbox = (jnp.abs(pcx - tcx) + jnp.abs(pcy - tcy)
                 + jnp.abs(pw - tw) + jnp.abs(ph - th))             # [B, N]
    cost = cost_bbox + cost_class

    n_idx = jax.lax.broadcasted_iota(jnp.int32, cost.shape, 1).astype(jnp.float32)
    min_cost = jnp.min(cost, axis=1, keepdims=True)                 # [B, 1]
    first = jnp.min(jnp.where(cost <= min_cost, n_idx, float(n_queries)),
                    axis=1, keepdims=True)                          # argmin, first tie
    fg = (n_idx == first).astype(jnp.float32)                       # [B, N], one 1/row

    # ---------------- classification: weighted CE over all queries -----------
    # C == 2 => -log softmax[target] = softplus(other_logit - target_logit)
    d = jnp.where(fg > 0.5, l1 - l0, l0 - l1)
    per_pos = jnp.maximum(d, 0.0) + jnp.log(1.0 + jnp.exp(-jnp.abs(d)))
    w = eos_coef + (1.0 - eos_coef) * fg            # empty_weight[target_class]
    # F.cross_entropy(..., weight=empty_weight): sum(w_i * l_i) / sum(w_i)
    out_ref[0] = jnp.sum(w * per_pos) / jnp.sum(w)

    # class_error = 100 - accuracy(src_logits[idx], target_classes_o)
    correct = (l0 >= l1).astype(jnp.float32)
    out_ref[1] = 100.0 - 100.0 * jnp.sum(fg * correct) / jnp.maximum(jnp.sum(fg), 1.0)

    # ---------------- boxes: matched-box "gather" via masked reduction -------
    cx1 = jnp.sum(fg * pcx, axis=1, keepdims=True)                  # [B, 1]
    cy1 = jnp.sum(fg * pcy, axis=1, keepdims=True)
    w1 = jnp.sum(fg * pw, axis=1, keepdims=True)
    h1 = jnp.sum(fg * ph, axis=1, keepdims=True)
    cx2, cy2, w2, h2 = tcx, tcy, tw, th                             # [B, 1]

    out_ref[2] = (jnp.sum(jnp.abs(cx1 - cx2) + jnp.abs(cy1 - cy2)
                          + jnp.abs(w1 - w2) + jnp.abs(h1 - h2))
                  * inv_num_boxes)

    # ---------------- CIoU + IoU ---------------------------------------------
    eps = 1e-7
    b1x1, b1x2 = cx1 - 0.5 * w1, cx1 + 0.5 * w1
    b1y1, b1y2 = cy1 - 0.5 * h1, cy1 + 0.5 * h1
    b2x1, b2x2 = cx2 - 0.5 * w2, cx2 + 0.5 * w2
    b2y1, b2y2 = cy2 - 0.5 * h2, cy2 + 0.5 * h2

    iw = jnp.maximum(jnp.minimum(b1x2, b2x2) - jnp.maximum(b1x1, b2x1), 0.0)
    ih = jnp.maximum(jnp.minimum(b1y2, b2y2) - jnp.maximum(b1y1, b2y1), 0.0)
    inter = iw * ih
    union = w1 * h1 + w2 * h2 - inter + eps
    iou = inter * pl.reciprocal(union, approx=True)

    cw = jnp.maximum(b1x2, b2x2) - jnp.minimum(b1x1, b2x1)          # enclosing box
    ch = jnp.maximum(b1y2, b2y2) - jnp.minimum(b1y1, b2y1)
    c2 = cw * cw + ch * ch + eps
    rho2 = (cx2 - cx1) ** 2 + (cy2 - cy1) ** 2                      # center dist^2
    v = (4.0 / (math.pi ** 2)) * (
        _atan(w2 * pl.reciprocal(h2 + eps, approx=True))
        - _atan(w1 * pl.reciprocal(h1 + eps, approx=True))) ** 2
    # TODO(synk): torch reference computes alpha under no_grad (stop_gradient);
    # this kernel is forward-only so the distinction does not matter here.
    alpha = v * pl.reciprocal(v - iou + 1.0 + eps, approx=True)
    ciou = iou - (rho2 * pl.reciprocal(c2, approx=True) + v * alpha)

    # mean over M matched boxes (M == num_boxes == B in SOT)
    out_ref[3] = 1.0 - jnp.sum(ciou) * inv_m
    out_ref[4] = jnp.sum(iou) * inv_m
    out_ref[5] = 0.0
    out_ref[6] = 0.0
    out_ref[7] = 0.0


# ------------------------------- wrapper -----------------------------------

_VMEM = pl.BlockSpec(memory_space=pltpu.MemorySpace.VMEM)
_SMEM = pl.BlockSpec(memory_space=pltpu.MemorySpace.SMEM)


def set_criterion_forward(pred_logits, pred_boxes, tgt_labels, tgt_boxes):
    """outputs = {'pred_logits': [B,N,C], 'pred_boxes': [B,N,4]},
       targets[b] = {'labels': [1], 'boxes': [1,4]} (flattened to [B] / [B,4])."""
    del tgt_labels  # TODO(synk): labels assumed == 0 (only foreground class in SOT)
    B, N, _ = pred_logits.shape

    # class-major logits [2, B, N] and coord-major boxes [4, B, N] / [4, B, 1]
    logits_t = jnp.transpose(pred_logits, (2, 0, 1))
    boxes_t = jnp.transpose(pred_boxes, (2, 0, 1))
    tgt_t = jnp.transpose(tgt_boxes.astype(jnp.float32))[:, :, None]

    # num_boxes_pos = clamp(#matches, 1) = B (static) -> baked constants.
    kernel = functools.partial(
        _criterion_kernel,
        eos_coef=float(EOS_COEF),
        inv_num_boxes=1.0 / max(float(B), 1.0),
        inv_m=1.0 / float(B),
        n_queries=int(N),
    )
    out = pl.pallas_call(
        kernel,
        out_shape=jax.ShapeDtypeStruct((8,), jnp.float32),
        in_specs=[_VMEM, _VMEM, _VMEM],
        out_specs=_SMEM,
    )(logits_t, boxes_t, tgt_t)

    return {
        'loss_ce': out[0],
        'class_error': out[1],
        'loss_bbox': out[2],
        'loss_ciou': out[3],
        'iou': out[4],
    }


# --------------------------------- main ------------------------------------

if __name__ == "__main__":
    key = jax.random.PRNGKey(0)
    B, N = 2, 8
    k1, k2, k3 = jax.random.split(key, 3)

    pred_logits = jax.random.normal(k1, (B, N, C), jnp.float32)
    pred_boxes = jax.nn.sigmoid(jax.random.normal(k2, (B, N, 4), jnp.float32))
    tgt_labels = jnp.zeros((B,), jnp.int32)                       # class 0 targets
    tgt_boxes = jax.nn.sigmoid(jax.random.normal(k3, (B, 4), jnp.float32))

    losses = jax.jit(set_criterion_forward)(pred_logits, pred_boxes,
                                            tgt_labels, tgt_boxes)
    jax.block_until_ready(losses)
    print("KERNEL_OK")
</pallas_src>

<mosaic_0001>
module attributes {stable_mosaic.version = 11 : i64} {
  func.func @_criterion_kernel(%arg0: memref<2x2x8xf32, #tpu.memory_space<vmem>>, %arg1: memref<4x2x8xf32, #tpu.memory_space<vmem>>, %arg2: memref<4x2x1xf32, #tpu.memory_space<vmem>>, %arg3: memref<8xf32, #tpu.memory_space<smem>>) attributes {dimension_semantics = [], scalar_prefetch = 0 : i64, scratch_operands = 0 : i64, tpu.core_type = #tpu.core_type<tc>} {
    %c0 = arith.constant 0 : index
    %c0_0 = arith.constant 0 : index
    %c0_1 = arith.constant 0 : index
    %0 = vector.load %arg0[%c0, %c0_0, %c0_1] : memref<2x2x8xf32, #tpu.memory_space<vmem>>, vector<1x2x8xf32>
    %1 = vector.shape_cast %0 : vector<1x2x8xf32> to vector<2x8xf32>
    %c1 = arith.constant 1 : index
    %c0_2 = arith.constant 0 : index
    %c0_3 = arith.constant 0 : index
    %2 = vector.load %arg0[%c1, %c0_2, %c0_3] : memref<2x2x8xf32, #tpu.memory_space<vmem>>, vector<1x2x8xf32>
    %3 = vector.shape_cast %2 : vector<1x2x8xf32> to vector<2x8xf32>
    %c0_4 = arith.constant 0 : index
    %c0_5 = arith.constant 0 : index
    %c0_6 = arith.constant 0 : index
    %4 = vector.load %arg1[%c0_4, %c0_5, %c0_6] : memref<4x2x8xf32, #tpu.memory_space<vmem>>, vector<1x2x8xf32>
    %5 = vector.shape_cast %4 : vector<1x2x8xf32> to vector<2x8xf32>
    %c1_7 = arith.constant 1 : index
    %c0_8 = arith.constant 0 : index
    %c0_9 = arith.constant 0 : index
    %6 = vector.load %arg1[%c1_7, %c0_8, %c0_9] : memref<4x2x8xf32, #tpu.memory_space<vmem>>, vector<1x2x8xf32>
    %7 = vector.shape_cast %6 : vector<1x2x8xf32> to vector<2x8xf32>
    %c2 = arith.constant 2 : index
    %c0_10 = arith.constant 0 : index
    %c0_11 = arith.constant 0 : index
    %8 = vector.load %arg1[%c2, %c0_10, %c0_11] : memref<4x2x8xf32, #tpu.memory_space<vmem>>, vector<1x2x8xf32>
    %9 = vector.shape_cast %8 : vector<1x2x8xf32> to vector<2x8xf32>
    %c3 = arith.constant 3 : index
    %c0_12 = arith.constant 0 : index
    %c0_13 = arith.constant 0 : index
    %10 = vector.load %arg1[%c3, %c0_12, %c0_13] : memref<4x2x8xf32, #tpu.memory_space<vmem>>, vector<1x2x8xf32>
    %11 = vector.shape_cast %10 : vector<1x2x8xf32> to vector<2x8xf32>
    %c0_14 = arith.constant 0 : index
    %c0_15 = arith.constant 0 : index
    %c0_16 = arith.constant 0 : index
    %12 = vector.load %arg2[%c0_14, %c0_15, %c0_16] : memref<4x2x1xf32, #tpu.memory_space<vmem>>, vector<1x2x1xf32>
    %13 = vector.shape_cast %12 : vector<1x2x1xf32> to vector<2x1xf32>
    %c1_17 = arith.constant 1 : index
    %c0_18 = arith.constant 0 : index
    %c0_19 = arith.constant 0 : index
    %14 = vector.load %arg2[%c1_17, %c0_18, %c0_19] : memref<4x2x1xf32, #tpu.memory_space<vmem>>, vector<1x2x1xf32>
    %15 = vector.shape_cast %14 : vector<1x2x1xf32> to vector<2x1xf32>
    %c2_20 = arith.constant 2 : index
    %c0_21 = arith.constant 0 : index
    %c0_22 = arith.constant 0 : index
    %16 = vector.load %arg2[%c2_20, %c0_21, %c0_22] : memref<4x2x1xf32, #tpu.memory_space<vmem>>, vector<1x2x1xf32>
    %17 = vector.shape_cast %16 : vector<1x2x1xf32> to vector<2x1xf32>
    %c3_23 = arith.constant 3 : index
    %c0_24 = arith.constant 0 : index
    %c0_25 = arith.constant 0 : index
    %18 = vector.load %arg2[%c3_23, %c0_24, %c0_25] : memref<4x2x1xf32, #tpu.memory_space<vmem>>, vector<1x2x1xf32>
    %19 = vector.shape_cast %18 : vector<1x2x1xf32> to vector<2x1xf32>
    %20 = arith.subf %3, %1 : vector<2x8xf32>
    %21 = math.exp %20 : vector<2x8xf32>
    %cst = arith.constant 1.000000e+00 : f32
    %22 = vector.broadcast %cst : f32 to vector<2x8xf32>
    %23 = arith.addf %22, %21 : vector<2x8xf32>
    %cst_26 = arith.constant -1.000000e+00 : f32
    %24 = vector.broadcast %cst_26 : f32 to vector<2x8xf32>
    %25 = arith.divf %24, %23 : vector<2x8xf32>
    %26 = vector.broadcast %13 : vector<2x1xf32> to vector<2x8xf32>
    %27 = arith.subf %5, %26 : vector<2x8xf32>
    %28 = math.absf %27 : vector<2x8xf32>
    %29 = vector.broadcast %15 : vector<2x1xf32> to vector<2x8xf32>
    %30 = arith.subf %7, %29 : vector<2x8xf32>
    %31 = math.absf %30 : vector<2x8xf32>
    %32 = arith.addf %28, %31 : vector<2x8xf32>
    %33 = vector.broadcast %17 : vector<2x1xf32> to vector<2x8xf32>
    %34 = arith.subf %9, %33 : vector<2x8xf32>
    %35 = math.absf %34 : vector<2x8xf32>
    %36 = arith.addf %32, %35 : vector<2x8xf32>
    %37 = vector.broadcast %19 : vector<2x1xf32> to vector<2x8xf32>
    %38 = arith.subf %11, %37 : vector<2x8xf32>
    %39 = math.absf %38 : vector<2x8xf32>
    %40 = arith.addf %36, %39 : vector<2x8xf32>
    %41 = arith.addf %40, %25 : vector<2x8xf32>
    %42 = tpu.iota {dimensions = array<i32: 1>} : vector<2x8xi32>
    %43 = arith.sitofp %42 : vector<2x8xi32> to vector<2x8xf32>
    %cst_27 = arith.constant dense<0x7F800000> : vector<2xf32>
    %44 = vector.multi_reduction <minimumf>, %41, %cst_27 [1] : vector<2x8xf32> to vector<2xf32>
    %45 = vector.shape_cast %44 : vector<2xf32> to vector<2x1xf32>
    %46 = vector.broadcast %45 : vector<2x1xf32> to vector<2x8xf32>
    %47 = arith.cmpf ole, %41, %46 : vector<2x8xf32>
    %cst_28 = arith.constant 8.000000e+00 : f32
    %48 = vector.broadcast %cst_28 : f32 to vector<2x8xf32>
    %49 = arith.select %47, %43, %48 : vector<2x8xi1>, vector<2x8xf32>
    %cst_29 = arith.constant dense<0x7F800000> : vector<2xf32>
    %50 = vector.multi_reduction <minimumf>, %49, %cst_29 [1] : vector<2x8xf32> to vector<2xf32>
    %51 = vector.shape_cast %50 : vector<2xf32> to vector<2x1xf32>
    %52 = vector.broadcast %51 : vector<2x1xf32> to vector<2x8xf32>
    %53 = arith.cmpf oeq, %43, %52 : vector<2x8xf32>
    %54 = arith.extui %53 : vector<2x8xi1> to vector<2x8xi32>
    %55 = arith.sitofp %54 : vector<2x8xi32> to vector<2x8xf32>
    %cst_30 = arith.constant 5.000000e-01 : f32
    %56 = vector.broadcast %cst_30 : f32 to vector<2x8xf32>
    %57 = arith.cmpf ogt, %55, %56 : vector<2x8xf32>
    %58 = arith.subf %3, %1 : vector<2x8xf32>
    %59 = arith.subf %1, %3 : vector<2x8xf32>
    %60 = arith.select %57, %58, %59 : vector<2x8xi1>, vector<2x8xf32>
    %cst_31 = arith.constant 0.000000e+00 : f32
    %61 = vector.broadcast %cst_31 : f32 to vector<2x8xf32>
    %62 = arith.maximumf %60, %61 : vector<2x8xf32>
    %63 = math.absf %60 : vector<2x8xf32>
    %cst_32 = arith.constant 0.000000e+00 : f32
    %64 = vector.broadcast %cst_32 : f32 to vector<2x8xf32>
    %65 = arith.subf %64, %63 : vector<2x8xf32>
    %66 = math.exp %65 : vector<2x8xf32>
    %cst_33 = arith.constant 1.000000e+00 : f32
    %67 = vector.broadcast %cst_33 : f32 to vector<2x8xf32>
    %68 = arith.addf %67, %66 : vector<2x8xf32>
    %69 = math.log %68 : vector<2x8xf32>
    %70 = arith.addf %62, %69 : vector<2x8xf32>
    %cst_34 = arith.constant 9.375000e-01 : f32
    %71 = vector.broadcast %cst_34 : f32 to vector<2x8xf32>
    %72 = arith.mulf %71, %55 : vector<2x8xf32>
    %cst_35 = arith.constant 6.250000e-02 : f32
    %73 = vector.broadcast %cst_35 : f32 to vector<2x8xf32>
    %74 = arith.addf %73, %72 : vector<2x8xf32>
    %75 = arith.mulf %74, %70 : vector<2x8xf32>
    %76 = vector.shape_cast %75 : vector<2x8xf32> to vector<1x2x8xf32>
    %cst_36 = arith.constant dense<0.000000e+00> : vector<1xf32>
    %77 = vector.multi_reduction <add>, %76, %cst_36 [1, 2] : vector<1x2x8xf32> to vector<1xf32>
    %78 = vector.shape_cast %77 : vector<1xf32> to vector<1x1x1xf32>
    %79 = vector.extract %78[0, 0, 0] : f32 from vector<1x1x1xf32>
    %80 = vector.shape_cast %74 : vector<2x8xf32> to vector<1x2x8xf32>
    %cst_37 = arith.constant dense<0.000000e+00> : vector<1xf32>
    %81 = vector.multi_reduction <add>, %80, %cst_37 [1, 2] : vector<1x2x8xf32> to vector<1xf32>
    %82 = vector.shape_cast %81 : vector<1xf32> to vector<1x1x1xf32>
    %83 = vector.extract %82[0, 0, 0] : f32 from vector<1x1x1xf32>
    %84 = arith.divf %79, %83 : f32
    %c0_38 = arith.constant 0 : index
    %85 = memref.load %arg3[%c0_38] : memref<8xf32, #tpu.memory_space<smem>>
    memref.store %84, %arg3[%c0_38] : memref<8xf32, #tpu.memory_space<smem>>
    %86 = arith.cmpf oge, %1, %3 : vector<2x8xf32>
    %87 = arith.extui %86 : vector<2x8xi1> to vector<2x8xi32>
    %88 = arith.sitofp %87 : vector<2x8xi32> to vector<2x8xf32>
    %89 = arith.mulf %55, %88 : vector<2x8xf32>
    %90 = vector.shape_cast %89 : vector<2x8xf32> to vector<1x2x8xf32>
    %cst_39 = arith.constant dense<0.000000e+00> : vector<1xf32>
    %91 = vector.multi_reduction <add>, %90, %cst_39 [1, 2] : vector<1x2x8xf32> to vector<1xf32>
    %92 = vector.shape_cast %91 : vector<1xf32> to vector<1x1x1xf32>
    %93 = vector.extract %92[0, 0, 0] : f32 from vector<1x1x1xf32>
    %cst_40 = arith.constant 1.000000e+02 : f32
    %94 = arith.mulf %cst_40, %93 : f32
    %95 = vector.shape_cast %55 : vector<2x8xf32> to vector<1x2x8xf32>
    %cst_41 = arith.constant dense<0.000000e+00> : vector<1xf32>
    %96 = vector.multi_reduction <add>, %95, %cst_41 [1, 2] : vector<1x2x8xf32> to vector<1xf32>
    %97 = vector.shape_cast %96 : vector<1xf32> to vector<1x1x1xf32>
    %98 = vector.extract %97[0, 0, 0] : f32 from vector<1x1x1xf32>
    %cst_42 = arith.constant 1.000000e+00 : f32
    %99 = arith.maximumf %98, %cst_42 : f32
    %100 = arith.divf %94, %99 : f32
    %cst_43 = arith.constant 1.000000e+02 : f32
    %101 = arith.subf %cst_43, %100 : f32
    %c1_44 = arith.constant 1 : index
    %102 = memref.load %arg3[%c1_44] : memref<8xf32, #tpu.memory_space<smem>>
    memref.store %101, %arg3[%c1_44] : memref<8xf32, #tpu.memory_space<smem>>
    %103 = arith.mulf %55, %5 : vector<2x8xf32>
    %cst_45 = arith.constant dense<0.000000e+00> : vector<2xf32>
    %104 = vector.multi_reduction <add>, %103, %cst_45 [1] : vector<2x8xf32> to vector<2xf32>
    %105 = vector.shape_cast %104 : vector<2xf32> to vector<2x1xf32>
    %106 = arith.mulf %55, %7 : vector<2x8xf32>
    %cst_46 = arith.constant dense<0.000000e+00> : vector<2xf32>
    %107 = vector.multi_reduction <add>, %106, %cst_46 [1] : vector<2x8xf32> to vector<2xf32>
    %108 = vector.shape_cast %107 : vector<2xf32> to vector<2x1xf32>
    %109 = arith.mulf %55, %9 : vector<2x8xf32>
    %cst_47 = arith.constant dense<0.000000e+00> : vector<2xf32>
    %110 = vector.multi_reduction <add>, %109, %cst_47 [1] : vector<2x8xf32> to vector<2xf32>
    %111 = vector.shape_cast %110 : vector<2xf32> to vector<2x1xf32>
    %112 = arith.mulf %55, %11 : vector<2x8xf32>
    %cst_48 = arith.constant dense<0.000000e+00> : vector<2xf32>
    %113 = vector.multi_reduction <add>, %112, %cst_48 [1] : vector<2x8xf32> to vector<2xf32>
    %114 = vector.shape_cast %113 : vector<2xf32> to vector<2x1xf32>
    %115 = arith.subf %105, %13 : vector<2x1xf32>
    %116 = math.absf %115 : vector<2x1xf32>
    %117 = arith.subf %108, %15 : vector<2x1xf32>
    %118 = math.absf %117 : vector<2x1xf32>
    %119 = arith.addf %116, %118 : vector<2x1xf32>
    %120 = arith.subf %111, %17 : vector<2x1xf32>
    %121 = math.absf %120 : vector<2x1xf32>
    %122 = arith.addf %119, %121 : vector<2x1xf32>
    %123 = arith.subf %114, %19 : vector<2x1xf32>
    %124 = math.absf %123 : vector<2x1xf32>
    %125 = arith.addf %122, %124 : vector<2x1xf32>
    %126 = vector.shape_cast %125 : vector<2x1xf32> to vector<1x2x1xf32>
    %cst_49 = arith.constant dense<0.000000e+00> : vector<1xf32>
    %127 = vector.multi_reduction <add>, %126, %cst_49 [1, 2] : vector<1x2x1xf32> to vector<1xf32>
    %128 = vector.shape_cast %127 : vector<1xf32> to vector<1x1x1xf32>
    %129 = vector.extract %128[0, 0, 0] : f32 from vector<1x1x1xf32>
    %cst_50 = arith.constant 5.000000e-01 : f32
    %130 = arith.mulf %129, %cst_50 : f32
    %c2_51 = arith.constant 2 : index
    %131 = memref.load %arg3[%c2_51] : memref<8xf32, #tpu.memory_space<smem>>
    memref.store %130, %arg3[%c2_51] : memref<8xf32, #tpu.memory_space<smem>>
    %cst_52 = arith.constant 5.000000e-01 : f32
    %132 = vector.broadcast %cst_52 : f32 to vector<2x1xf32>
    %133 = arith.mulf %132, %111 : vector<2x1xf32>
    %134 = arith.subf %105, %133 : vector<2x1xf32>
    %cst_53 = arith.constant 5.000000e-01 : f32
    %135 = vector.broadcast %cst_53 : f32 to vector<2x1xf32>
    %136 = arith.mulf %135, %111 : vector<2x1xf32>
    %137 = arith.addf %105, %136 : vector<2x1xf32>
    %cst_54 = arith.constant 5.000000e-01 : f32
    %138 = vector.broadcast %cst_54 : f32 to vector<2x1xf32>
    %139 = arith.mulf %138, %114 : vector<2x1xf32>
    %140 = arith.subf %108, %139 : vector<2x1xf32>
    %cst_55 = arith.constant 5.000000e-01 : f32
    %141 = vector.broadcast %cst_55 : f32 to vector<2x1xf32>
    %142 = arith.mulf %141, %114 : vector<2x1xf32>
    %143 = arith.addf %108, %142 : vector<2x1xf32>
    %cst_56 = arith.constant 5.000000e-01 : f32
    %144 = vector.broadcast %cst_56 : f32 to vector<2x1xf32>
    %145 = arith.mulf %144, %17 : vector<2x1xf32>
    %146 = arith.subf %13, %145 : vector<2x1xf32>
    %cst_57 = arith.constant 5.000000e-01 : f32
    %147 = vector.broadcast %cst_57 : f32 to vector<2x1xf32>
    %148 = arith.mulf %147, %17 : vector<2x1xf32>
    %149 = arith.addf %13, %148 : vector<2x1xf32>
    %cst_58 = arith.constant 5.000000e-01 : f32
    %150 = vector.broadcast %cst_58 : f32 to vector<2x1xf32>
    %151 = arith.mulf %150, %19 : vector<2x1xf32>
    %152 = arith.subf %15, %151 : vector<2x1xf32>
    %cst_59 = arith.constant 5.000000e-01 : f32
    %153 = vector.broadcast %cst_59 : f32 to vector<2x1xf32>
    %154 = arith.mulf %153, %19 : vector<2x1xf32>
    %155 = arith.addf %15, %154 : vector<2x1xf32>
    %156 = arith.minimumf %137, %149 : vector<2x1xf32>
    %157 = arith.maximumf %134, %146 : vector<2x1xf32>
    %158 = arith.subf %156, %157 : vector<2x1xf32>
    %cst_60 = arith.constant 0.000000e+00 : f32
    %159 = vector.broadcast %cst_60 : f32 to vector<2x1xf32>
    %160 = arith.maximumf %158, %159 : vector<2x1xf32>
    %161 = arith.minimumf %143, %155 : vector<2x1xf32>
    %162 = arith.maximumf %140, %152 : vector<2x1xf32>
    %163 = arith.subf %161, %162 : vector<2x1xf32>
    %cst_61 = arith.constant 0.000000e+00 : f32
    %164 = vector.broadcast %cst_61 : f32 to vector<2x1xf32>
    %165 = arith.maximumf %163, %164 : vector<2x1xf32>
    %166 = arith.mulf %160, %165 : vector<2x1xf32>
    %167 = arith.mulf %111, %114 : vector<2x1xf32>
    %168 = arith.mulf %17, %19 : vector<2x1xf32>
    %169 = arith.addf %167, %168 : vector<2x1xf32>
    %170 = arith.subf %169, %166 : vector<2x1xf32>
    %cst_62 = arith.constant 1.000000e-07 : f32
    %171 = vector.broadcast %cst_62 : f32 to vector<2x1xf32>
    %172 = arith.addf %170, %171 : vector<2x1xf32>
    %173 = tpu.reciprocal %172 {approx = true} : vector<2x1xf32> -> vector<2x1xf32>
    %174 = arith.mulf %166, %173 : vector<2x1xf32>
    %175 = arith.maximumf %137, %149 : vector<2x1xf32>
    %176 = arith.minimumf %134, %146 : vector<2x1xf32>
    %177 = arith.subf %175, %176 : vector<2x1xf32>
    %178 = arith.maximumf %143, %155 : vector<2x1xf32>
    %179 = arith.minimumf %140, %152 : vector<2x1xf32>
    %180 = arith.subf %178, %179 : vector<2x1xf32>
    %181 = arith.mulf %177, %177 : vector<2x1xf32>
    %182 = arith.mulf %180, %180 : vector<2x1xf32>
    %183 = arith.addf %181, %182 : vector<2x1xf32>
    %cst_63 = arith.constant 1.000000e-07 : f32
    %184 = vector.broadcast %cst_63 : f32 to vector<2x1xf32>
    %185 = arith.addf %183, %184 : vector<2x1xf32>
    %186 = arith.subf %13, %105 : vector<2x1xf32>
    %187 = arith.mulf %186, %186 : vector<2x1xf32>
    %188 = arith.subf %15, %108 : vector<2x1xf32>
    %189 = arith.mulf %188, %188 : vector<2x1xf32>
    %190 = arith.addf %187, %189 : vector<2x1xf32>
    %cst_64 = arith.constant 1.000000e-07 : f32
    %191 = vector.broadcast %cst_64 : f32 to vector<2x1xf32>
    %192 = arith.addf %19, %191 : vector<2x1xf32>
    %193 = tpu.reciprocal %192 {approx = true} : vector<2x1xf32> -> vector<2x1xf32>
    %194 = arith.mulf %17, %193 : vector<2x1xf32>
    %cst_65 = arith.constant 0.000000e+00 : f32
    %195 = vector.broadcast %cst_65 : f32 to vector<2x1xf32>
    %196 = arith.cmpf olt, %194, %195 : vector<2x1xf32>
    %cst_66 = arith.constant -1.000000e+00 : f32
    %cst_67 = arith.constant 1.000000e+00 : f32
    %197 = vector.broadcast %cst_66 : f32 to vector<2x1xf32>
    %198 = vector.broadcast %cst_67 : f32 to vector<2x1xf32>
    %199 = arith.select %196, %197, %198 : vector<2x1xi1>, vector<2x1xf32>
    %200 = math.absf %194 : vector<2x1xf32>
    %cst_68 = arith.constant 1.000000e+00 : f32
    %201 = vector.broadcast %cst_68 : f32 to vector<2x1xf32>
    %202 = arith.cmpf ogt, %200, %201 : vector<2x1xf32>
    %cst_69 = arith.constant 1.000000e-30 : f32
    %203 = vector.broadcast %cst_69 : f32 to vector<2x1xf32>
    %204 = arith.maximumf %200, %203 : vector<2x1xf32>
    %205 = tpu.reciprocal %204 {approx = true} : vector<2x1xf32> -> vector<2x1xf32>
    %206 = arith.select %202, %205, %200 : vector<2x1xi1>, vector<2x1xf32>
    %207 = arith.mulf %206, %206 : vector<2x1xf32>
    %cst_70 = arith.constant 2.083510e-02 : f32
    %208 = vector.broadcast %cst_70 : f32 to vector<2x1xf32>
    %209 = arith.mulf %207, %208 : vector<2x1xf32>
    %cst_71 = arith.constant -8.513300e-02 : f32
    %210 = vector.broadcast %cst_71 : f32 to vector<2x1xf32>
    %211 = arith.addf %210, %209 : vector<2x1xf32>
    %212 = arith.mulf %207, %211 : vector<2x1xf32>
    %cst_72 = arith.constant 1.801410e-01 : f32
    %213 = vector.broadcast %cst_72 : f32 to vector<2x1xf32>
    %214 = arith.addf %213, %212 : vector<2x1xf32>
    %215 = arith.mulf %207, %214 : vector<2x1xf32>
    %cst_73 = arith.constant -0.330299497 : f32
    %216 = vector.broadcast %cst_73 : f32 to vector<2x1xf32>
    %217 = arith.addf %216, %215 : vector<2x1xf32>
    %218 = arith.mulf %207, %217 : vector<2x1xf32>
    %cst_74 = arith.constant 9.998660e-01 : f32
    %219 = vector.broadcast %cst_74 : f32 to vector<2x1xf32>
    %220 = arith.addf %219, %218 : vector<2x1xf32>
    %221 = arith.mulf %206, %220 : vector<2x1xf32>
    %cst_75 = arith.constant 1.57079637 : f32
    %222 = vector.broadcast %cst_75 : f32 to vector<2x1xf32>
    %223 = arith.subf %222, %221 : vector<2x1xf32>
    %224 = arith.select %202, %223, %221 : vector<2x1xi1>, vector<2x1xf32>
    %225 = arith.mulf %199, %224 : vector<2x1xf32>
    %cst_76 = arith.constant 1.000000e-07 : f32
    %226 = vector.broadcast %cst_76 : f32 to vector<2x1xf32>
    %227 = arith.addf %114, %226 : vector<2x1xf32>
    %228 = tpu.reciprocal %227 {approx = true} : vector<2x1xf32> -> vector<2x1xf32>
    %229 = arith.mulf %111, %228 : vector<2x1xf32>
    %cst_77 = arith.constant 0.000000e+00 : f32
    %230 = vector.broadcast %cst_77 : f32 to vector<2x1xf32>
    %231 = arith.cmpf olt, %229, %230 : vector<2x1xf32>
    %cst_78 = arith.constant -1.000000e+00 : f32
    %cst_79 = arith.constant 1.000000e+00 : f32
    %232 = vector.broadcast %cst_78 : f32 to vector<2x1xf32>
    %233 = vector.broadcast %cst_79 : f32 to vector<2x1xf32>
    %234 = arith.select %231, %232, %233 : vector<2x1xi1>, vector<2x1xf32>
    %235 = math.absf %229 : vector<2x1xf32>
    %cst_80 = arith.constant 1.000000e+00 : f32
    %236 = vector.broadcast %cst_80 : f32 to vector<2x1xf32>
    %237 = arith.cmpf ogt, %235, %236 : vector<2x1xf32>
    %cst_81 = arith.constant 1.000000e-30 : f32
    %238 = vector.broadcast %cst_81 : f32 to vector<2x1xf32>
    %239 = arith.maximumf %235, %238 : vector<2x1xf32>
    %240 = tpu.reciprocal %239 {approx = true} : vector<2x1xf32> -> vector<2x1xf32>
    %241 = arith.select %237, %240, %235 : vector<2x1xi1>, vector<2x1xf32>
    %242 = arith.mulf %241, %241 : vector<2x1xf32>
    %cst_82 = arith.constant 2.083510e-02 : f32
    %243 = vector.broadcast %cst_82 : f32 to vector<2x1xf32>
    %244 = arith.mulf %242, %243 : vector<2x1xf32>
    %cst_83 = arith.constant -8.513300e-02 : f32
    %245 = vector.broadcast %cst_83 : f32 to vector<2x1xf32>
    %246 = arith.addf %245, %244 : vector<2x1xf32>
    %247 = arith.mulf %242, %246 : vector<2x1xf32>
    %cst_84 = arith.constant 1.801410e-01 : f32
    %248 = vector.broadcast %cst_84 : f32 to vector<2x1xf32>
    %249 = arith.addf %248, %247 : vector<2x1xf32>
    %250 = arith.mulf %242, %249 : vector<2x1xf32>
    %cst_85 = arith.constant -0.330299497 : f32
    %251 = vector.broadcast %cst_85 : f32 to vector<2x1xf32>
    %252 = arith.addf %251, %250 : vector<2x1xf32>
    %253 = arith.mulf %242, %252 : vector<2x1xf32>
    %cst_86 = arith.constant 9.998660e-01 : f32
    %254 = vector.broadcast %cst_86 : f32 to vector<2x1xf32>
    %255 = arith.addf %254, %253 : vector<2x1xf32>
    %256 = arith.mulf %241, %255 : vector<2x1xf32>
    %cst_87 = arith.constant 1.57079637 : f32
    %257 = vector.broadcast %cst_87 : f32 to vector<2x1xf32>
    %258 = arith.subf %257, %256 : vector<2x1xf32>
    %259 = arith.select %237, %258, %256 : vector<2x1xi1>, vector<2x1xf32>
    %260 = arith.mulf %234, %259 : vector<2x1xf32>
    %261 = arith.subf %225, %260 : vector<2x1xf32>
    %262 = arith.mulf %261, %261 : vector<2x1xf32>
    %cst_88 = arith.constant 0.405284733 : f32
    %263 = vector.broadcast %cst_88 : f32 to vector<2x1xf32>
    %264 = arith.mulf %263, %262 : vector<2x1xf32>
    %265 = arith.subf %264, %174 : vector<2x1xf32>
    %cst_89 = arith.constant 1.000000e+00 : f32
    %266 = vector.broadcast %cst_89 : f32 to vector<2x1xf32>
    %267 = arith.addf %265, %266 : vector<2x1xf32>
    %cst_90 = arith.constant 1.000000e-07 : f32
    %268 = vector.broadcast %cst_90 : f32 to vector<2x1xf32>
    %269 = arith.addf %267, %268 : vector<2x1xf32>
    %270 = tpu.reciprocal %269 {approx = true} : vector<2x1xf32> -> vector<2x1xf32>
    %271 = arith.mulf %264, %270 : vector<2x1xf32>
    %272 = tpu.reciprocal %185 {approx = true} : vector<2x1xf32> -> vector<2x1xf32>
    %273 = arith.mulf %190, %272 : vector<2x1xf32>
    %274 = arith.mulf %264, %271 : vector<2x1xf32>
    %275 = arith.addf %273, %274 : vector<2x1xf32>
    %276 = arith.subf %174, %275 : vector<2x1xf32>
    %277 = vector.shape_cast %276 : vector<2x1xf32> to vector<1x2x1xf32>
    %cst_91 = arith.constant dense<0.000000e+00> : vector<1xf32>
    %278 = vector.multi_reduction <add>, %277, %cst_91 [1, 2] : vector<1x2x1xf32> to vector<1xf32>
    %279 = vector.shape_cast %278 : vector<1xf32> to vector<1x1x1xf32>
    %280 = vector.extract %279[0, 0, 0] : f32 from vector<1x1x1xf32>
    %cst_92 = arith.constant 5.000000e-01 : f32
    %281 = arith.mulf %280, %cst_92 : f32
    %cst_93 = arith.constant 1.000000e+00 : f32
    %282 = arith.subf %cst_93, %281 : f32
    %c3_94 = arith.constant 3 : index
    %283 = memref.load %arg3[%c3_94] : memref<8xf32, #tpu.memory_space<smem>>
    memref.store %282, %arg3[%c3_94] : memref<8xf32, #tpu.memory_space<smem>>
    %284 = vector.shape_cast %174 : vector<2x1xf32> to vector<1x2x1xf32>
    %cst_95 = arith.constant dense<0.000000e+00> : vector<1xf32>
    %285 = vector.multi_reduction <add>, %284, %cst_95 [1, 2] : vector<1x2x1xf32> to vector<1xf32>
    %286 = vector.shape_cast %285 : vector<1xf32> to vector<1x1x1xf32>
    %287 = vector.extract %286[0, 0, 0] : f32 from vector<1x1x1xf32>
    %cst_96 = arith.constant 5.000000e-01 : f32
    %288 = arith.mulf %287, %cst_96 : f32
    %c4 = arith.constant 4 : index
    %289 = memref.load %arg3[%c4] : memref<8xf32, #tpu.memory_space<smem>>
    memref.store %288, %arg3[%c4] : memref<8xf32, #tpu.memory_space<smem>>
    %cst_97 = arith.constant 0.000000e+00 : f32
    %c5 = arith.constant 5 : index
    %290 = memref.load %arg3[%c5] : memref<8xf32, #tpu.memory_space<smem>>
    memref.store %cst_97, %arg3[%c5] : memref<8xf32, #tpu.memory_space<smem>>
    %cst_98 = arith.constant 0.000000e+00 : f32
    %c6 = arith.constant 6 : index
    %291 = memref.load %arg3[%c6] : memref<8xf32, #tpu.memory_space<smem>>
    memref.store %cst_98, %arg3[%c6] : memref<8xf32, #tpu.memory_space<smem>>
    %cst_99 = arith.constant 0.000000e+00 : f32
    %c7 = arith.constant 7 : index
    %292 = memref.load %arg3[%c7] : memref<8xf32, #tpu.memory_space<smem>>
    memref.store %cst_99, %arg3[%c7] : memref<8xf32, #tpu.memory_space<smem>>
    return
  }
}

</mosaic_0001>

<bundles_post_ra>
// kernel: set_criterion_forward.1
= control target key start
LH: loop header
LB: loop body
LE: loop exit
PB: predicated region body
PF: predicated region fallthrough
CT: control target
= control target key end

     0   :  { %v425_v2 = vmov 0   ;;  %s607_s0 = inlined_call_operand.vmem [shape: f32[2,2,8], index: 0, kind: input, shape index: {}]   ;;  %s608_s1 = inlined_call_operand.vmem [shape: f32[4,2,8], index: 1, kind: input, shape index: {}]   ;;  %s609_s2 = inlined_call_operand.vmem [shape: f32[4,2,1], index: 2, kind: input, shape index: {}]   ;;  %s610_s3 = inlined_call_operand.vmem [shape: f32[8], index: 3, kind: output, shape index: {}]  }
   0x1   :  { %v454_v0 = vld [vmem:[%s609_s2 + $0x4] sm:$0x3]  ;;  %v459_v1 = vld [vmem:[%s609_s2] sm:$0x3]  ;;  %384 = vset.pattern.permute.xlu1 %v425_v2  ;;  %383 = vset.pattern.permute.xlu0 %v425_v2  ;;  %v466_v3 = vld [vmem:[%s609_s2 + $0x6] sm:$0x3] }
   0x2   :  { %55 = vperm.xlu1 %384, %v454_v0   ;;  %40 = vperm.xlu0 %383, %v459_v1   ;;  %v471_v4 = vld [vmem:[%s609_s2 + $0x2] sm:$0x3] }
   0x3   :  { %8 = vsyncpa [#allocation3], 0  ;;  %v478_v5 = vld [vmem:[%s607_s0] sm:$0x3]  ;;  %v483_v6 = vld [vmem:[%s607_s0 + $0x2] sm:$0x3]  ;;  %v70_v34 = vlaneseq }
   0x4   :  { %v32_v7 = vsub.f32 %v483_v6, %v478_v5  ;;  %v490_v13 = vld [vmem:[%s608_s1] sm:$0x3]  ;;  %v352_v14 = vld [vmem:[%s608_s1 + $0x4] sm:$0x3]  ;;  %v351_v15 = vld [vmem:[%s608_s1 + $0x2] sm:$0x3]  ;;  %v86_v43 = vsub.f32 %v478_v5, %v483_v6  ;;  %vm126_vm4 = vcmp.ge.f32.partialorder %v478_v5, %v483_v6 }
   0x5   :  { %v353_v18 = vld [vmem:[%s608_s1 + $0x6] sm:$0x3]  ;;  %vm73_vm0 = vcmask 58368   ;;  %v71_v35 = vand.u32 127, %v70_v34  ;;  %v426_v41 = vmov 0.0   ;;  %vm186_vm8 = vcmask 1024  }
   0x6   :  { %63 = vperm.xlu1 %384, %v466_v3   ;;  %47 = vperm.xlu0 %383, %v471_v4   ;;  %v33_v8 = vmul.f32 1.442695, %v32_v7  ;;  %s428_s8 = smov 1.0   ;;  %s429_s10 = smov 0.0  }
   0x7   :  { %v72_v36 = vcvt.s32.f32 %v71_v35  ;;  %330 = sst [smem:[#allocation2 + $0x5]] %s429_s10  ;;  %s341_s19 = sshll.u32 %s610_s3, 4  ;;  %s342_s19 = int_to_ptr.vmem [resolvable:$true] %s341_s19 }
   0x8   :  { %385 = vpow2.f32 %v33_v8  ;;  %332 = sst [smem:[#allocation2 + $0x6]] %s429_s10  ;;  %s411_s24 = scalar_lea.vmem %s342_s19, 16 }
   0x9   :  { %334 = sst [smem:[#allocation2 + $0x7]] %s429_s10  ;;  %p412_p0 = scmp.ne.s32.totalorder %s342_s19, %s411_s24 }
   0xa   :  { %p416_p1 = scmp.lt.s32.totalorder %s342_s19, %s342_s19  ;;  %p417_p2 = scmp.lt.s32.totalorder %s411_s24, %s411_s24 }
   0xc   :  { %p418_p3 = por %p417_p2, %p416_p1 }
   0xe   :  { %p419_p4 = pnand %p418_p3, %p412_p0 }
  0x12   :  { %v386_v9 = vpop.eup %385 }
  0x13   :  { %v35_v10 = vadd.f32 1.0, %v386_v9  ;;  %v358_v9 = vsel %vm126_vm4, 1.0, %v426_v41 }
  0x15   :  { %387 = vrcp.f32 %v35_v10 }
  0x1f   :  { %v388_v25 = vpop.eup %387 }
  0x20   :  { %v37_v30 = vmul.f32 -1.0, %v388_v25 }
  0x81   :  { %v56_v11 = vpop.permute.xlu1 %55  ;;  %v41_v12 = vpop.permute.xlu0 %40 }
  0x82   :  { %v43_v16 = vsub.f32 %v490_v13, %v41_v12  ;;  %v58_v20 = vsub.f32 %v352_v14, %v56_v11 }
  0x84   :  { %v44_v22 = vand.u32 2147483647, %v43_v16  ;;  %v59_v26 = vand.u32 2147483647, %v58_v20 }
  0x85   :  { %v64_v17 = vpop.permute.xlu1 %63  ;;  %v48_v19 = vpop.permute.xlu0 %47 }
  0x86   :  { %v50_v21 = vsub.f32 %v351_v15, %v48_v19  ;;  %v66_v23 = vsub.f32 %v353_v18, %v64_v17 }
  0x88   :  { %v51_v24 = vand.u32 2147483647, %v50_v21  ;;  %v67_v28 = vand.u32 2147483647, %v66_v23 }
  0x8a   :  { %v52_v27 = vadd.f32 %v51_v24, %v44_v22 }
  0x8c   :  { %v60_v29 = vadd.f32 %v59_v26, %v52_v27 }
  0x8e   :  { %v68_v31 = vadd.f32 %v67_v28, %v60_v29 }
  0x90   :  { %v69_v32 = vadd.f32 %v68_v31, %v37_v30 }
  0x92   :  { %v74_v33 = vsel %vm73_vm0, %v69_v32, inf }
  0x93   :  { %75 = vmin.xlane.f32.xlu0 %v74_v33 }
 0x120   :  { %v76_v37 = vpop.xlane.xlu0 %75 }
 0x121   :  { %vm77_vm1 = vcmp.le.f32.partialorder %v69_v32, %v76_v37  ;;  %v209_v37 = vmul.f32 0.5, %v466_v3 }
 0x122   :  { %v78_v38 = vsel %vm77_vm1, %v72_v36, 8.0 }
 0x123   :  { %v79_v39 = vsel %vm73_vm0, %v78_v38, inf }
 0x124   :  { %80 = vmin.xlane.f32.xlu1 %v79_v39 }
 0x1b1   :  { %v81_v40 = vpop.xlane.xlu1 %80 }
 0x1b2   :  { %vm82_vm2 = vcmp.eq.f32.partialorder %v72_v36, %v81_v40 }
 0x1b3   :  { %v357_v42 = vsel %vm82_vm2, 1.0, %v426_v41 }
 0x1b4   :  { %v171_v44 = vmul.f32 %v357_v42, %v353_v18  ;;  %vm85_vm3 = vcmp.gt.f32.partialorder %v357_v42, 0.5  ;;  %v167_v46 = vmul.f32 %v357_v42, %v352_v14  ;;  %v97_v47 = vmul.f32 0.9375, %v357_v42 }
 0x1b5   :  { %v87_v48 = vsel %vm85_vm3, %v32_v7, %v86_v43  ;;  %v163_v55 = vmul.f32 %v357_v42, %v351_v15  ;;  %v141_v57 = vsel %vm73_vm0, %v357_v42, 0.0  ;;  %v159_v8 = vmul.f32 %v357_v42, %v490_v13 }
 0x1b6   :  { %v172_v45 = vsel %vm73_vm0, %v171_v44, 0.0  ;;  %v89_v49 = vand.u32 2147483647, %v87_v48  ;;  %v168_v50 = vsel %vm73_vm0, %v167_v46, 0.0  ;;  %v98_v51 = vadd.f32 0.0625, %v97_v47 }
 0x1b7   :  { %173 = vadd.xlane.f32.xlu0 %v172_v45  ;;  %v164_v56 = vsel %vm73_vm0, %v163_v55, 0.0  ;;  %v88_v61 = vmax.f32 %v87_v48, 0.0  ;;  %v160_v10 = vsel %vm73_vm0, %v159_v8, 0.0  ;;  %v129_v11 = vmul.f32 %v358_v9, %v357_v42 }
 0x1b8   :  { %v90_v52 = vsub.f32 0.0, %v89_v49  ;;  %v110_v54 = vsel %vm73_vm0, %v98_v51, 0.0  ;;  %v243_v14 = vadd.f32 1e-07, %v466_v3  ;;  %v206_v44 = vmul.f32 0.5, %v454_v0 }
 0x1b9   :  { %v130_v12 = vsel %vm73_vm0, %v129_v11, 0.0  ;;  %v548_v45 = vsub.f32 %v471_v4, %v209_v37  ;;  %v551_v46 = vadd.f32 %v471_v4, %v209_v37 }
 0x1ba   :  { %v91_v53 = vmul.f32 1.442695, %v90_v52 }
 0x1bb   :  { %169 = vadd.xlane.f32.xlu0 %v168_v50 }
 0x1bc   :  { %389 = vpow2.f32 %v91_v53 }
 0x1bf   :  { %111 = vadd.xlane.f32.xlu0 %v110_v54 }
 0x1c3   :  { %165 = vadd.xlane.f32.xlu0 %v164_v56  ;;  %v562_v56 = vsub.f32 %v459_v1, %v206_v44 }
 0x1c6   :  { %v390_v58 = vpop.eup %389 }
 0x1c7   :  { %142 = vadd.xlane.f32.xlu0 %v141_v57  ;;  %v93_v59 = vadd.f32 1.0, %v390_v58  ;;  %v565_v57 = vadd.f32 %v206_v44, %v459_v1  ;;  %v427_v44 = vmov 1.0  }
 0x1c9   :  { %391 = vlog2.f32 %v93_v59 }
 0x1ca   :  { %393 = vrcp.f32 %v243_v14 }
 0x1d3   :  { %v392_v60 = vpop.eup %391 }
 0x1d4   :  { %v95_v62 = vmul.f32 0.6931472, %v392_v60  ;;  %v394_v15 = vpop.eup %393 }
 0x1d5   :  { %v519_v16 = vmul.f32 %v394_v15, %v454_v0 }
 0x1d6   :  { %v96_v63 = vadd.f32 %v95_v62, %v88_v61 }
 0x1d7   :  { %v522_v5 = vand.u32 2147483647, %v519_v16  ;;  %vm246_vm7 = vcmp.lt.f32.partialorder %v519_v16, 0.0 }
 0x1d8   :  { %v99_v2 = vmul.f32 %v98_v51, %v96_v63 }
 0x1d9   :  { %v250_v6 = vmax.f32 %v522_v5, 1e-30  ;;  %vm249_vm5 = vcmp.gt.f32.partialorder %v522_v5, 1.0 }
 0x1da   :  { %v100_v7 = vsel %vm73_vm0, %v99_v2, 0.0 }
 0x1db   :  { %101 = vadd.xlane.f32.xlu1 %v100_v7  ;;  %395 = vrcp.f32 %v250_v6 }
 0x1df   :  { %161 = vadd.xlane.f32.xlu1 %v160_v10 }
 0x1e3   :  { %131 = vadd.xlane.f32.xlu1 %v130_v12 }
 0x1e5   :  { %v396_v17 = vpop.eup %395 }
 0x1e6   :  { %v252_v19 = vsel %vm249_vm5, %v396_v17, %v522_v5 }
 0x1e7   :  { %v253_v20 = vmul.f32 %v252_v19, %v252_v19 }
 0x1e9   :  { %v254_v21 = vmul.f32 0.0208351, %v253_v20 }
 0x1eb   :  { %v255_v25 = vadd.f32 -0.085133, %v254_v21 }
 0x1ed   :  { %v256_v28 = vmul.f32 %v255_v25, %v253_v20 }
 0x1ef   :  { %v257_v29 = vadd.f32 0.180141, %v256_v28 }
 0x1f1   :  { %v258_v30 = vmul.f32 %v257_v29, %v253_v20 }
 0x1f3   :  { %v259_v34 = vadd.f32 -0.3302995, %v258_v30 }
 0x1f5   :  { %v260_v42 = vmul.f32 %v259_v34, %v253_v20 }
 0x1f7   :  { %v261_v52 = vadd.f32 0.999866, %v260_v42 }
 0x1f9   :  { %v262_v12 = vmul.f32 %v261_v52, %v252_v19 }
 0x244   :  { %v525_v13 = vpop.xlane.xlu0 %173 }
 0x245   :  { %v266_v18 = vadd.f32 1e-07, %v525_v13  ;;  %v203_v41 = vmul.f32 0.5, %v525_v13  ;;  %v183_v6 = vsub.f32 %v525_v13, %v466_v3 }
 0x247   :  { %397 = vrcp.f32 %v266_v18 }
 0x248   :  { %v170_v23 = vpop.xlane.xlu0 %169 }
 0x249   :  { %v200_v58 = vmul.f32 0.5, %v170_v23  ;;  %v180_v62 = vsub.f32 %v170_v23, %v454_v0  ;;  %v221_v25 = vmul.f32 %v525_v13, %v170_v23 }
 0x24b   :  { %v181_v29 = vand.u32 2147483647, %v180_v62 }
 0x24c   :  { %v112_v31 = vpop.xlane.xlu0 %111 }
 0x24d   :  { %v113_v33 = vrot.slane %v112_v31, 4 }
 0x24f   :  { %v114_v39 = vadd.f32 %v113_v33, %v112_v31 }
 0x250   :  { %v543_v40 = vpop.xlane.xlu0 %165 }
 0x251   :  { %v398_v22 = vpop.eup %397  ;;  %v554_v47 = vsub.f32 %v543_v40, %v203_v41  ;;  %v557_v48 = vadd.f32 %v203_v41, %v543_v40  ;;  %v115_v50 = vrot.slane %v114_v39, 2  ;;  %v177_v55 = vsub.f32 %v543_v40, %v471_v4 }
 0x252   :  { %v532_v24 = vmul.f32 %v398_v22, %v170_v23  ;;  %v222_v22 = vmul.f32 %v466_v3, %v454_v0 }
 0x253   :  { %v216_v59 = vmin.f32 %v557_v48, %v551_v46  ;;  %v217_v60 = vmax.f32 %v554_v47, %v548_v45  ;;  %v116_v7 = vadd.f32 %v115_v50, %v114_v39  ;;  %v178_v15 = vand.u32 2147483647, %v177_v55 }
 0x254   :  { %v535_v26 = vand.u32 2147483647, %v532_v24  ;;  %v223_v0 = vadd.f32 %v222_v22, %v221_v25  ;;  %vm269_vm9 = vcmp.lt.f32.partialorder %v532_v24, 0.0  ;;  %v231_v5 = vmax.f32 %v557_v48, %v551_v46 }
 0x255   :  { %v218_v21 = vsub.f32 %v216_v59, %v217_v60  ;;  %v117_v19 = vrot.slane %v116_v7, 1  ;;  %v270_v52 = vsel %vm269_vm9, -1.0, %v427_v44  ;;  %v232_v59 = vmin.f32 %v554_v47, %v548_v45 }
 0x256   :  { %v273_v27 = vmax.f32 %v535_v26, 1e-30  ;;  %vm272_vm6 = vcmp.gt.f32.partialorder %v535_v26, 1.0  ;;  %v240_v47 = vsub.f32 %v471_v4, %v543_v40 }
 0x257   :  { %v219_v41 = vmax.f32 %v218_v21, 0.0  ;;  %v118_v3 = vadd.f32 %v117_v19, %v116_v7 }
 0x258   :  { %399 = vrcp.f32 %v273_v27 }
 0x262   :  { %v400_v32 = vpop.eup %399 }
 0x263   :  { %v275_v35 = vsel %vm272_vm6, %v400_v32, %v535_v26  ;;  %v263_v32 = vsub.f32 1.5707964, %v262_v12  ;;  %v233_v26 = vsub.f32 %v231_v5, %v232_v59 }
 0x264   :  { %v276_v36 = vmul.f32 %v275_v35, %v275_v35 }
 0x265   :  { %v264_v50 = vsel %vm249_vm5, %v263_v32, %v262_v12  ;;  %v235_v7 = vmul.f32 %v233_v26, %v233_v26 }
 0x266   :  { %v277_v38 = vmul.f32 0.0208351, %v276_v36 }
 0x268   :  { %v278_v43 = vadd.f32 -0.085133, %v277_v38  ;;  %v102_v51 = vpop.xlane.xlu1 %101  ;;  %v184_v38 = vand.u32 2147483647, %v183_v6  ;;  %v241_v6 = vmul.f32 %v240_v47, %v240_v47 }
 0x269   :  { %v103_v53 = vrot.slane %v102_v51, 4 }
 0x26a   :  { %v279_v49 = vmul.f32 %v278_v43, %v276_v36 }
 0x26b   :  { %v104_v61 = vadd.f32 %v103_v53, %v102_v51 }
 0x26c   :  { %v280_v54 = vadd.f32 0.180141, %v279_v49  ;;  %v572_v2 = vpop.xlane.xlu1 %161  ;;  %v247_v49 = vsel %vm246_vm7, -1.0, %v427_v44 }
 0x26d   :  { %v105_v8 = vrot.slane %v104_v61, 2  ;;  %v175_v9 = vsub.f32 %v572_v2, %v459_v1  ;;  %v201_v10 = vsub.f32 %v572_v2, %v200_v58  ;;  %v202_v11 = vadd.f32 %v200_v58, %v572_v2 }
 0x26e   :  { %v281_v63 = vmul.f32 %v280_v54, %v276_v36  ;;  %v265_v55 = vmul.f32 %v264_v50, %v247_v49  ;;  %v238_v45 = vsub.f32 %v459_v1, %v572_v2 }
 0x26f   :  { %v176_v17 = vand.u32 2147483647, %v175_v9  ;;  %v212_v18 = vmin.f32 %v202_v11, %v565_v57  ;;  %v213_v20 = vmax.f32 %v201_v10, %v562_v56  ;;  %v106_v28 = vadd.f32 %v105_v8, %v104_v61 }
 0x270   :  { %v282_v14 = vadd.f32 -0.3302995, %v281_v63  ;;  %v228_v53 = vmax.f32 %v202_v11, %v565_v57  ;;  %v229_v24 = vmin.f32 %v201_v10, %v562_v56  ;;  %v132_v25 = vpop.xlane.xlu1 %131 }
 0x271   :  { %v179_v30 = vadd.f32 %v178_v15, %v176_v17  ;;  %v214_v31 = vsub.f32 %v212_v18, %v213_v20  ;;  %v107_v34 = vrot.slane %v106_v28, 1  ;;  %v133_v19 = vrot.slane %v132_v25, 4 }
 0x272   :  { %v283_v27 = vmul.f32 %v282_v14, %v276_v36  ;;  %v230_v60 = vsub.f32 %v228_v53, %v229_v24  ;;  %v239_v14 = vmul.f32 %v238_v45, %v238_v45 }
 0x273   :  { %v182_v37 = vadd.f32 %v181_v29, %v179_v30  ;;  %v215_v39 = vmax.f32 %v214_v31, 0.0  ;;  %v108_v43 = vadd.f32 %v107_v34, %v106_v28  ;;  %v143_v28 = vpop.xlane.xlu0 %142  ;;  %v134_v1 = vadd.f32 %v133_v19, %v132_v25 }
 0x274   :  { %v284_v33 = vadd.f32 0.999866, %v283_v27  ;;  %v234_v62 = vmul.f32 %v230_v60, %v230_v60  ;;  %v242_v18 = vadd.f32 %v241_v6, %v239_v14  ;;  %v144_v30 = vrot.slane %v143_v28, 4 }
 0x275   :  { %v185_v13 = vadd.f32 %v184_v38, %v182_v37  ;;  %v220_v23 = vmul.f32 %v219_v41, %v215_v39  ;;  %359 = vpush %v108_v43  ;;  %v135_v4 = vrot.slane %v134_v1, 2 }
 0x276   :  { %v285_v42 = vmul.f32 %v284_v33, %v275_v35  ;;  %361 = vpush %v118_v3  ;;  %v236_v57 = vadd.f32 %v235_v7, %v234_v62  ;;  %v145_v2 = vadd.f32 %v144_v30, %v143_v28 }
 0x277   :  { %v187_v51 = vsel %vm186_vm8, %v185_v13, 0.0  ;;  %v224_v16 = vsub.f32 %v223_v0, %v220_v23  ;;  %v136_v33 = vadd.f32 %v135_v4, %v134_v1 }
 0x278   :  { %v286_v36 = vsub.f32 1.5707964, %v285_v42  ;;  %188 = vadd.xlane.f32.xlu1 %v187_v51  ;;  %v237_v12 = vadd.f32 1e-07, %v236_v57  ;;  %v146_v40 = vrot.slane %v145_v2, 2 }
 0x279   :  { %v225_v54 = vadd.f32 1e-07, %v224_v16  ;;  %v137_v37 = vrot.slane %v136_v33, 1 }
 0x27a   :  { %v287_v35 = vsel %vm272_vm6, %v286_v36, %v285_v42  ;;  %v147_v34 = vadd.f32 %v146_v40, %v145_v2 }
 0x27b   :  { %v288_v58 = vmul.f32 %v287_v35, %v270_v52  ;;  %401 = vrcp.f32 %v225_v54  ;;  %v138_v41 = vadd.f32 %v137_v37, %v136_v33 }
 0x27c   :  { %403 = vrcp.f32 %v237_v12  ;;  %v148_v38 = vrot.slane %v147_v34, 1 }
 0x27d   :  { %v289_v61 = vsub.f32 %v265_v55, %v288_v58 }
 0x27e   :  { %v149_v42 = vadd.f32 %v148_v38, %v147_v34 }
 0x27f   :  { %v290_v63 = vmul.f32 %v289_v61, %v289_v61 }
 0x281   :  { %v291_v9 = vmul.f32 0.40528473, %v290_v63 }
 0x285   :  { %v402_v8 = vpop.eup %401 }
 0x286   :  { %v227_v56 = vmul.f32 %v402_v8, %v220_v23  ;;  %v404_v15 = vpop.eup %403 }
 0x287   :  { %v298_v21 = vmul.f32 %v404_v15, %v242_v18 }
 0x288   :  { %v292_v10 = vsub.f32 %v291_v9, %v227_v56  ;;  %v316_v11 = vsel %vm186_vm8, %v227_v56, 0.0 }
 0x289   :  { %317 = vadd.xlane.f32.xlu1 %v316_v11 }
 0x28a   :  { %v293_v46 = vadd.f32 1.0, %v292_v10 }
 0x28c   :  { %v294_v48 = vadd.f32 1e-07, %v293_v46 }
 0x28e   :  { %405 = vrcp.f32 %v294_v48 }
 0x298   :  { %v406_v17 = vpop.eup %405 }
 0x299   :  { %v296_v20 = vmul.f32 %v406_v17, %v291_v9 }
 0x29b   :  { %v299_v22 = vmul.f32 %v296_v20, %v291_v9 }
 0x29d   :  { %v300_v27 = vadd.f32 %v299_v22, %v298_v21 }
 0x29f   :  { %v301_v29 = vsub.f32 %v227_v56, %v300_v27 }
 0x2a1   :  { %v302_v31 = vsel %vm186_vm8, %v301_v29, 0.0 }
 0x2a2   :  { %303 = vadd.xlane.f32.xlu0 %v302_v31 }
 0x2a6   :  { %s360_s1 = spop %359 }
 0x2a7   :  { %s362_s30 = spop %361 }
 0x2a8   :  { %v120_v32 = vstv %s362_s30 }
 0x2a9   :  { %407 = vrcp.f32 %v120_v32 }
 0x2b3   :  { %v408_v39 = vpop.eup %407 }
 0x2b4   :  { %363 = vpush %v408_v39 }
 0x2b5   :  { %365 = vpush %v138_v41 }
 0x2b6   :  { %367 = vpush %v149_v42 }
 0x2e5   :  { %s364_s4 = spop %363 }
 0x2e6   :  { %s123_s5 = smul.f32 %s364_s4, %s360_s1  ;;  %s366_s6 = spop %365 }
 0x2e7   :  { %s368_s7 = spop %367  ;;  %s140_s11 = smul.f32 100.0, %s366_s6 }
 0x2e8   :  { %125 = sst [smem:[#allocation2]] %s123_s5  ;;  %s151_s9 = smax.f32 %s428_s8, %s368_s7 }
 0x2e9   :  { %v152_v43 = vstv %s151_s9 }
 0x2ea   :  { %409 = vrcp.f32 %v152_v43 }
 0x2f4   :  { %v410_v0 = vpop.eup %409 }
 0x2f5   :  { %369 = vpush %v410_v0 }
 0x305   :  { %v189_v3 = vpop.xlane.xlu1 %188 }
 0x306   :  { %v190_v13 = vrot.slane %v189_v3, 4 }
 0x308   :  { %v191_v23 = vadd.f32 %v190_v13, %v189_v3 }
 0x30a   :  { %v192_v36 = vrot.slane %v191_v23, 2 }
 0x30c   :  { %v193_v44 = vadd.f32 %v192_v36, %v191_v23 }
 0x30e   :  { %v194_v49 = vrot.slane %v193_v44, 1 }
 0x310   :  { %v195_v50 = vadd.f32 %v194_v49, %v193_v44 }
 0x312   :  { %371 = vpush %v195_v50 }
 0x316   :  { %v318_v51 = vpop.xlane.xlu1 %317 }
 0x317   :  { %v319_v16 = vrot.slane %v318_v51, 4 }
 0x319   :  { %v320_v35 = vadd.f32 %v319_v16, %v318_v51 }
 0x31b   :  { %v321_v52 = vrot.slane %v320_v35, 2 }
 0x31d   :  { %v322_v55 = vadd.f32 %v321_v52, %v320_v35 }
 0x31f   :  { %v323_v59 = vrot.slane %v322_v55, 1 }
 0x321   :  { %v324_v26 = vadd.f32 %v323_v59, %v322_v55 }
 0x326   :  { %s370_s12 = spop %369 }
 0x327   :  { %s155_s13 = smul.f32 %s370_s12, %s140_s11 }
 0x329   :  { %s156_s14 = ssub.f32 100.0, %s155_s13 }
 0x32b   :  { %158 = sst [smem:[#allocation2 + $0x1]] %s156_s14 }
 0x32f   :  { %v304_v53 = vpop.xlane.xlu0 %303 }
 0x330   :  { %v305_v24 = vrot.slane %v304_v53, 4 }
 0x332   :  { %v306_v54 = vadd.f32 %v305_v24, %v304_v53 }
 0x334   :  { %v307_v58 = vrot.slane %v306_v54, 2 }
 0x336   :  { %v308_v5 = vadd.f32 %v307_v58, %v306_v54 }
 0x338   :  { %v309_v60 = vrot.slane %v308_v5, 1 }
 0x33a   :  { %v310_v61 = vadd.f32 %v309_v60, %v308_v5 }
 0x33c   :  { %373 = vpush %v310_v61 }
 0x33d   :  { %375 = vpush %v324_v26 }
 0x343   :  { %s372_s15 = spop %371 }
 0x344   :  { %s197_s16 = smul.f32 0.5, %s372_s15 }
 0x346   :  { %199 = sst [smem:[#allocation2 + $0x2]] %s197_s16 }
 0x36d   :  { %s374_s20 = spop %373 }
 0x36e   :  { %s312_s21 = smul.f32 0.5, %s374_s20  ;;  %s376_s22 = spop %375 }
 0x36f   :  { %s326_s23 = smul.f32 0.5, %s376_s22 }
 0x370   :  { %s313_s2 = ssub.f32 1.0, %s312_s21 }
 0x371   :  { %328 = sst [smem:[#allocation2 + $0x4]] %s326_s23 }
 0x372   :  { %315 = sst [smem:[#allocation2 + $0x3]] %s313_s2 }
 0x373   :  { %422 = shalt.err (!%p419_p4)
}
 0x374   :  { %s430_s25 = smov [#allocation2]  }
 0x375   :  { %344 = dma.smem_to_vmem %s430_s25, 16, %s342_s19, [#allocation3]  }
 0x376   :  { %423 = dma.done.wait [#allocation3], 16  }
 0x377   :  { %424 = vsyncadd [#allocation3], 4294967280 }
 0x378   :  { %348 = sfence }
 0x379   :  { %349 = vsyncpa [#allocation3], 1 }

</bundles_post_ra>
